<compile_context>
chip_gen: v7x
topology: tpu7x:2x2x1
jax: 0.10.0
libtpu: 0.0.40
codegen_flags: <defaults>
</compile_context>

<pallas_src>
import math

import jax
import jax.numpy as jnp
from jax.experimental import pallas as pl
from jax.experimental.pallas import tpu as pltpu


# ---------------------------------------------------------------------------
# helpers
# ---------------------------------------------------------------------------
def _round_up(n, m):
    return ((n + m - 1) // m) * m


def _pad2d(x, rows, cols):
    r, c = x.shape
    if r == rows and c == cols:
        return x
    return jnp.pad(x, ((0, rows - r), (0, cols - c)))


def _pick_b_tile(batch):
    # Sublane axis: either the full batch (<= 8) or a multiple of 8 (pad batch).
    return batch if batch <= 8 else 8


def _pick_f_tile(feat, b_tile, bytes_per_elem=4, target_block_bytes=1 << 20):
    # Lane-dense tile: a multiple of 128, sized so one block is ~1 MiB.
    lane_budget = max(512, (target_block_bytes // (b_tile * bytes_per_elem)) // 128 * 128)
    return min(_round_up(feat, 128), lane_budget)


# ---------------------------------------------------------------------------
# Pallas kernel 1: per-sample interpolation  interp = a*real + (1-a)*fake
# ---------------------------------------------------------------------------
def _interpolate_kernel(alpha_ref, fake_ref, real_ref, out_ref):
    a = alpha_ref[...]                                          # (b_tile, 1), broadcasts over lanes
    out_ref[...] = a * real_ref[...] + (1.0 - a) * fake_ref[...]


def interpolate_images(fake, real, alpha):
    """Per-sample convex blend of real/fake, computed lane-dense as (B, C*H*W)."""
    batch = fake.shape[0]
    feat = math.prod(fake.shape[1:])
    f2 = fake.reshape(batch, feat)
    r2 = real.reshape(batch, feat)
    a2 = alpha.reshape(batch, 1).astype(fake.dtype)

    b_tile = _pick_b_tile(batch)
    b_pad = _round_up(batch, b_tile)
    f_tile = _pick_f_tile(feat, b_tile, bytes_per_elem=fake.dtype.itemsize)
    f_pad = _round_up(feat, f_tile)
    f2 = _pad2d(f2, b_pad, f_pad)
    r2 = _pad2d(r2, b_pad, f_pad)
    a2 = _pad2d(a2, b_pad, 1)

    grid = (b_pad // b_tile, f_pad // f_tile)
    out = pl.pallas_call(
        _interpolate_kernel,
        out_shape=jax.ShapeDtypeStruct((b_pad, f_pad), fake.dtype),
        grid=grid,
        in_specs=[
            pl.BlockSpec((b_tile, 1), lambda i, j: (i, 0)),
            pl.BlockSpec((b_tile, f_tile), lambda i, j: (i, j)),
            pl.BlockSpec((b_tile, f_tile), lambda i, j: (i, j)),
        ],
        out_specs=pl.BlockSpec((b_tile, f_tile), lambda i, j: (i, j)),
        compiler_params=pltpu.CompilerParams(
            dimension_semantics=("parallel", "parallel")),
    )(a2, f2, r2)
    return out[:batch, :feat].reshape(fake.shape)


# ---------------------------------------------------------------------------
# Pallas kernel 2: gradient penalty per-row term (||g_row||_2 - 1)^2
# ---------------------------------------------------------------------------
def _grad_penalty_kernel(g_ref, pen_ref, acc_ref):
    """Grid: (batch blocks ['parallel'], feature blocks ['arbitrary', innermost]).

    acc_ref is a VMEM vector accumulator: the hot loop is a pure elementwise
    multiply-add; the cross-lane reduction + sqrt happen once in the epilogue.
    """
    j = pl.program_id(1)

    @pl.when(j == 0)
    def _():
        acc_ref[...] = jnp.zeros_like(acc_ref)

    g = g_ref[...].astype(jnp.float32)
    acc_ref[...] += g * g

    @pl.when(j == pl.num_programs(1) - 1)
    def _():
        row_ss = jnp.sum(acc_ref[...], axis=-1, keepdims=True)   # (b_tile, 1)
        norm = jnp.sqrt(row_ss)
        pen_ref[...] = (norm - 1.0) ** 2


def gradient_penalty_loss(grad, lambda_gp):
    """lambda_gp * mean_b((||grad_b||_2 - 1)^2) via a Pallas reduction kernel."""
    batch = grad.shape[0]
    feat = math.prod(grad.shape[1:])
    g2 = grad.reshape(batch, feat).astype(jnp.float32)

    b_tile = _pick_b_tile(batch)
    b_pad = _round_up(batch, b_tile)
    f_tile = _pick_f_tile(feat, b_tile)
    f_pad = _round_up(feat, f_tile)
    # Zero padding does not change the per-row sum of squares; padded batch rows
    # (if any) are sliced off before the mean below.
    g2 = _pad2d(g2, b_pad, f_pad)

    grid = (b_pad // b_tile, f_pad // f_tile)
    per_row = pl.pallas_call(
        _grad_penalty_kernel,
        out_shape=jax.ShapeDtypeStruct((b_pad, 1), jnp.float32),
        grid=grid,
        in_specs=[pl.BlockSpec((b_tile, f_tile), lambda i, j: (i, j))],
        out_specs=pl.BlockSpec((b_tile, 1), lambda i, j: (i, 0)),
        scratch_shapes=[pltpu.VMEM((b_tile, f_tile), jnp.float32)],
        compiler_params=pltpu.CompilerParams(
            dimension_semantics=("parallel", "arbitrary")),
    )(g2)
    return lambda_gp * jnp.mean(per_row[:batch, 0])


# ---------------------------------------------------------------------------
# Example discriminator D (plain JAX; stands in for the external D_net)
# ---------------------------------------------------------------------------
def init_discriminator(key, channels, hidden=8):
    k1, k2 = jax.random.split(key)
    w1 = 0.1 * jax.random.normal(k1, (channels, hidden), jnp.float32)
    b1 = jnp.zeros((hidden,), jnp.float32)
    w2 = 0.1 * jax.random.normal(k2, (hidden,), jnp.float32)
    b2 = jnp.zeros((), jnp.float32)
    return (w1, b1, w2, b2)


def discriminator_forward(params, x):
    """Tiny pixel-level discriminator: 1x1 conv -> leaky relu -> 1x1 conv to a score map."""
    w1, b1, w2, b2 = params
    h = jnp.einsum("bchw,cd->bdhw", x, w1) + b1[None, :, None, None]
    h = jax.nn.leaky_relu(h, 0.2)
    score = jnp.einsum("bdhw,d->bhw", h, w2) + b2
    return [score]   # mimic the "out[0]" list structure of D_net


# ---------------------------------------------------------------------------
# CriterionAdditionalGP.forward
# ---------------------------------------------------------------------------
def criterion_additional_gp(d_in_S, d_in_T, d_params, lambda_gp, alpha):
    fake_images = d_in_S[0]
    real_images = d_in_T[0]
    assert fake_images.shape == real_images.shape, (
        "the output dim of D with teacher and student as input differ")

    interpolated = interpolate_images(fake_images, real_images, alpha)       # Pallas
    # TODO(synk): autograd.grad through the external D_net has no Pallas equivalent.
    grad = jax.grad(
        lambda x: jnp.sum(discriminator_forward(d_params, x)[0]))(interpolated)
    return gradient_penalty_loss(grad, lambda_gp)                            # Pallas


# ---------------------------------------------------------------------------
# Pure-JAX reference for verification
# ---------------------------------------------------------------------------
def _reference_loss(d_in_S, d_in_T, d_params, lambda_gp, alpha):
    fake = d_in_S[0]
    real = d_in_T[0]
    a = alpha.reshape(-1, 1, 1, 1)
    interp = a * real + (1.0 - a) * fake
    grad = jax.grad(
        lambda x: jnp.sum(discriminator_forward(d_params, x)[0]))(interp)
    g = grad.reshape(grad.shape[0], -1)
    norm = jnp.sqrt(jnp.sum(g * g, axis=1))
    return lambda_gp * jnp.mean((norm - 1.0) ** 2)


if __name__ == "__main__":
    key = jax.random.PRNGKey(0)
    k_s, k_t, k_a, k_d = jax.random.split(key, 4)

    B, C, H, W = 2, 4, 16, 16
    d_out_S = jax.random.normal(k_s, (B, C, H, W), dtype=jnp.float32)
    d_out_T = jax.random.normal(k_t, (B, C, H, W), dtype=jnp.float32)
    alpha = jax.random.uniform(k_a, (B,), dtype=jnp.float32)   # torch.rand(B,1,1,1)
    d_params = init_discriminator(k_d, C)
    lambda_gp = 10.0

    loss = criterion_additional_gp([d_out_S], [d_out_T], d_params, lambda_gp, alpha)
    loss = jax.block_until_ready(loss)

    ref = _reference_loss([d_out_S], [d_out_T], d_params, lambda_gp, alpha)
    assert jnp.allclose(loss, ref, rtol=1e-5, atol=1e-5), (loss, ref)

    print("KERNEL_OK")
</pallas_src>

<mosaic_0001>
module attributes {stable_mosaic.version = 11 : i64} {
  func.func @_interpolate_kernel(%arg0: i32, %arg1: i32, %arg2: memref<2x1xf32, #tpu.memory_space<vmem>>, %arg3: memref<2x1024xf32, #tpu.memory_space<vmem>>, %arg4: memref<2x1024xf32, #tpu.memory_space<vmem>>, %arg5: memref<2x1024xf32, #tpu.memory_space<vmem>>) attributes {dimension_semantics = [#tpu.dimension_semantics<parallel>, #tpu.dimension_semantics<parallel>], iteration_bounds = array<i64: 1, 1>, scalar_prefetch = 0 : i64, scratch_operands = 0 : i64, tpu.core_type = #tpu.core_type<tc>, window_params = [{transform_indices = @transform_0, window_bounds = array<i64: 2, 1>}, {transform_indices = @transform_1, window_bounds = array<i64: 2, 1024>}, {transform_indices = @transform_2, window_bounds = array<i64: 2, 1024>}, {transform_indices = @transform_3, window_bounds = array<i64: 2, 1024>}]} {
    %c0 = arith.constant 0 : index
    %c0_0 = arith.constant 0 : index
    %0 = vector.load %arg2[%c0, %c0_0] : memref<2x1xf32, #tpu.memory_space<vmem>>, vector<2x1xf32>
    %c0_1 = arith.constant 0 : index
    %c0_2 = arith.constant 0 : index
    %1 = vector.load %arg4[%c0_1, %c0_2] : memref<2x1024xf32, #tpu.memory_space<vmem>>, vector<2x1024xf32>
    %2 = vector.broadcast %0 : vector<2x1xf32> to vector<2x1024xf32>
    %3 = arith.mulf %2, %1 : vector<2x1024xf32>
    %cst = arith.constant 1.000000e+00 : f32
    %4 = vector.broadcast %cst : f32 to vector<2x1xf32>
    %5 = arith.subf %4, %0 : vector<2x1xf32>
    %c0_3 = arith.constant 0 : index
    %c0_4 = arith.constant 0 : index
    %6 = vector.load %arg3[%c0_3, %c0_4] : memref<2x1024xf32, #tpu.memory_space<vmem>>, vector<2x1024xf32>
    %7 = vector.broadcast %5 : vector<2x1xf32> to vector<2x1024xf32>
    %8 = arith.mulf %7, %6 : vector<2x1024xf32>
    %9 = arith.addf %3, %8 : vector<2x1024xf32>
    %c0_5 = arith.constant 0 : index
    %c0_6 = arith.constant 0 : index
    %10 = vector.load %arg5[%c0_5, %c0_6] : memref<2x1024xf32, #tpu.memory_space<vmem>>, vector<2x1024xf32>
    tpu.vector_store %arg5[%c0_5, %c0_6], %9 {strides = array<i32>} : memref<2x1024xf32, #tpu.memory_space<vmem>>, vector<2x1024xf32>,
    return
  }
  func.func @transform_0(%arg0: i32, %arg1: i32) -> (i32, i32) {
    %c0_i32 = arith.constant 0 : i32
    %c0_i32_0 = arith.constant 0 : i32
    return %arg0, %c0_i32 : i32, i32
  }
  func.func @transform_1(%arg0: i32, %arg1: i32) -> (i32, i32) {
    %c0_i32 = arith.constant 0 : i32
    return %arg0, %arg1 : i32, i32
  }
  func.func @transform_2(%arg0: i32, %arg1: i32) -> (i32, i32) {
    %c0_i32 = arith.constant 0 : i32
    return %arg0, %arg1 : i32, i32
  }
  func.func @transform_3(%arg0: i32, %arg1: i32) -> (i32, i32) {
    %c0_i32 = arith.constant 0 : i32
    return %arg0, %arg1 : i32, i32
  }
}

</mosaic_0001>

<bundles_post_ra>
// kernel: tpu_custom_call.1
= control target key start
LH: loop header
LB: loop body
LE: loop exit
PB: predicated region body
PF: predicated region fallthrough
CT: control target
= control target key end

     0   :  { %8 = vsyncpa [#allocation3], 0  ;;  %s375_s0 = inlined_call_operand.vmem [shape: f32[2,1], index: 0, kind: input, shape index: {}]   ;;  %s376_s1 = inlined_call_operand.hbm [shape: f32[2,1024], index: 1, kind: input, shape index: {}]   ;;  %s377_s2 = inlined_call_operand.hbm [shape: f32[2,1024], index: 2, kind: input, shape index: {}]   ;;  %s378_s3 = inlined_call_operand.hbm [shape: f32[2,1024], index: 3, kind: output, shape index: {}]  }
   0x1   :  { %9 = vsyncpa [#allocation6], 0 }
   0x2   :  { %10 = vsyncpa [#allocation4], 0  ;;  %s311_s12 = smov [#allocation2]   ;;  %s312_s14 = smov [#allocation5]  }
   0x3   :  { %s19_s13 = sshll.u32 %s311_s12, 4  ;;  %s29_s15 = sshll.u32 %s312_s14, 4  ;;  %s20_s13 = int_to_ptr.vmem [resolvable:$true] %s19_s13  ;;  %s30_s15 = int_to_ptr.vmem [resolvable:$true] %s29_s15 }
   0x4   :  { %s239_s18 = scalar_lea.hbm %s376_s1, 256 }
   0x5   :  { %p240_p0 = scmp.ne.s32.totalorder %s376_s1, %s239_s18  ;;  %p243_p1 = scmp.lt.u32.totalorder %s239_s18, %s376_s1 }
   0x7   :  { %p245_p2 = pnand %p243_p1, %p240_p0 }
   0x9   :  { %248 = shalt.err (!%p245_p2)
}
   0xa   :  { %s249_s23 = scalar_lea.vmem %s20_s13, 256  ;;  %p254_p4 = scmp.lt.s32.totalorder %s20_s13, %s20_s13 }
   0xb   :  { %p250_p3 = scmp.ne.s32.totalorder %s20_s13, %s249_s23  ;;  %p255_p5 = scmp.lt.s32.totalorder %s249_s23, %s249_s23 }
   0xd   :  { %p256_p6 = por %p255_p5, %p254_p4 }
   0xf   :  { %p257_p7 = pnand %p256_p6, %p250_p3 }
  0x11   :  { %260 = shalt.err (!%p257_p7)
}
  0x12   :  { %22 = dma.hbm_to_vmem [thread:$0]  %s376_s1, 256, %s20_s13, [#allocation3]  }
  0x13   :  { %s261_s28 = scalar_lea.hbm %s377_s2, 256 }
  0x14   :  { %p262_p8 = scmp.ne.s32.totalorder %s377_s2, %s261_s28  ;;  %p265_p9 = scmp.lt.u32.totalorder %s261_s28, %s377_s2 }
  0x16   :  { %p267_p10 = pnand %p265_p9, %p262_p8 }
  0x18   :  { %270 = shalt.err (!%p267_p10)
}
  0x19   :  { %s271_s6 = scalar_lea.vmem %s30_s15, 256  ;;  %p276_p12 = scmp.lt.s32.totalorder %s30_s15, %s30_s15 }
  0x1a   :  { %p272_p11 = scmp.ne.s32.totalorder %s30_s15, %s271_s6  ;;  %p277_p13 = scmp.lt.s32.totalorder %s271_s6, %s271_s6 }
  0x1c   :  { %p278_p0 = por %p277_p13, %p276_p12 }
  0x1e   :  { %p279_p1 = pnand %p278_p0, %p272_p11 }
  0x20   :  { %282 = shalt.err (!%p279_p1)
}
  0x21   :  { %32 = dma.hbm_to_vmem [thread:$0]  %s377_s2, 256, %s30_s15, [#allocation6]  }
  0x22   :  { %305 = dma.done.wait [#allocation3], 256  }
  0x23   :  { %306 = vsyncadd [#allocation3], 4294967040 }
  0x24   :  { %307 = dma.done.wait [#allocation6], 256  }
  0x25   :  { %308 = vsyncadd [#allocation6], 4294967040  ;;  %v313_v0 = vmov 0   ;;  %v39_v1 = vld [vmem:[%s375_s0] sm:$0x3]  ;;  %v53_v5 = vlaneseq  ;;  %v40_v8 = vld [vmem:[#allocation5] sm:$0xff] }
  0x26   :  { %234 = vset.pattern.permute.xlu0 %v313_v0  ;;  %v99_v2 = vsub.f32 1.0, %v39_v1  ;;  %v314_v3 = vmov 1983009808   ;;  %v41_v9 = vld [vmem:[#allocation5 + $0x8] sm:$0xff]  ;;  %v100_v10 = vld [vmem:[#allocation2] sm:$0xff]  ;;  %v49_v11 = vcombine.high %v40_v8, %v40_v8  ;;  %v101_v13 = vld [vmem:[#allocation2 + $0x8] sm:$0xff] }
  0x27   :  { %44 = vperm.xlu0 %234, %v39_v1   ;;  %v51_v4 = vunpack.c.l.s4 %v314_v3  ;;  %v54_v7 = vshrl.u32 %v53_v5, 7  ;;  %v66_v14 = vcombine.high %v41_v9, %v41_v9  ;;  %v109_v15 = vcombine.high %v100_v10, %v100_v10  ;;  %s315_s0 = smov [#allocation7]  }
  0x28   :  { %v126_v16 = vcombine.high %v101_v13, %v101_v13  ;;  %s219_s2 = sshll.u32 %s315_s0, 4  ;;  %s220_s2 = int_to_ptr.vmem [resolvable:$true] %s219_s2 }
  0x29   :  { %v52_v6 = vunpack.c.0.s8 %v51_v4  ;;  %s283_s10 = scalar_lea.vmem %s220_s2, 256  ;;  %p288_p3 = scmp.lt.s32.totalorder %s220_s2, %s220_s2 }
  0x2a   :  { %p284_p2 = scmp.ne.s32.totalorder %s220_s2, %s283_s10  ;;  %p289_p4 = scmp.lt.s32.totalorder %s283_s10, %s283_s10 }
  0x2b   :  { %104 = vperm.xlu0 %234, %v99_v2   ;;  %v55_v12 = vsub.s32 %v52_v6, %v54_v7 }
  0x2c   :  { %p290_p5 = por %p289_p4, %p288_p3 }
  0x2d   :  { %v56_v17 = vrot.slane %v40_v8, %v55_v12  ;;  %v63_v18 = vrot.slane %v49_v11, %v55_v12  ;;  %v73_v19 = vrot.slane %v41_v9, %v55_v12  ;;  %v80_v20 = vrot.slane %v66_v14, %v55_v12 }
  0x2e   :  { %v116_v21 = vrot.slane %v100_v10, %v55_v12  ;;  %v123_v22 = vrot.slane %v109_v15, %v55_v12  ;;  %v133_v23 = vrot.slane %v101_v13, %v55_v12  ;;  %v140_v24 = vrot.slane %v126_v16, %v55_v12  ;;  %p291_p6 = pnand %p290_p5, %p284_p2 }
  0x2f   :  { %v64_v25 = vcombine.high %v56_v17, %v56_v17  ;;  %v65_v26 = vcombine.high %v63_v18, %v63_v18  ;;  %v81_v28 = vcombine.high %v73_v19, %v73_v19  ;;  %v82_v29 = vcombine.high %v80_v20, %v80_v20 }
  0x30   :  { %v124_v30 = vcombine.high %v116_v21, %v116_v21  ;;  %v125_v31 = vcombine.high %v123_v22, %v123_v22  ;;  %v141_v32 = vcombine.high %v133_v23, %v133_v23  ;;  %v142_v33 = vcombine.high %v140_v24, %v140_v24 }
  0xa6   :  { %v45_v27 = vpop.permute.xlu0 %44 }
  0xa7   :  { %v91_v34 = vmul.f32 %v56_v17, %v45_v27  ;;  %v92_v35 = vmul.f32 %v64_v25, %v45_v27  ;;  %v93_v36 = vmul.f32 %v63_v18, %v45_v27  ;;  %v94_v37 = vmul.f32 %v65_v26, %v45_v27 }
  0xa8   :  { %v95_v39 = vmul.f32 %v73_v19, %v45_v27  ;;  %v96_v40 = vmul.f32 %v81_v28, %v45_v27  ;;  %v97_v41 = vmul.f32 %v80_v20, %v45_v27  ;;  %v98_v42 = vmul.f32 %v82_v29, %v45_v27 }
  0xaa   :  { %v105_v38 = vpop.permute.xlu0 %104 }
  0xab   :  { %v151_v43 = vmul.f32 %v116_v21, %v105_v38  ;;  %v152_v44 = vmul.f32 %v124_v30, %v105_v38  ;;  %v153_v45 = vmul.f32 %v123_v22, %v105_v38  ;;  %v154_v46 = vmul.f32 %v125_v31, %v105_v38 }
  0xac   :  { %v155_v47 = vmul.f32 %v133_v23, %v105_v38  ;;  %v156_v48 = vmul.f32 %v141_v32, %v105_v38  ;;  %v157_v49 = vmul.f32 %v140_v24, %v105_v38  ;;  %v158_v50 = vmul.f32 %v142_v33, %v105_v38 }
  0xad   :  { %v159_v51 = vadd.f32 %v151_v43, %v91_v34  ;;  %v160_v52 = vadd.f32 %v152_v44, %v92_v35  ;;  %v161_v53 = vadd.f32 %v153_v45, %v93_v36  ;;  %v162_v54 = vadd.f32 %v154_v46, %v94_v37 }
  0xae   :  { %v163_v55 = vadd.f32 %v155_v47, %v95_v39  ;;  %v164_v56 = vadd.f32 %v156_v48, %v96_v40  ;;  %v165_v57 = vadd.f32 %v157_v49, %v97_v41  ;;  %v166_v58 = vadd.f32 %v158_v50, %v98_v42 }
  0xaf   :  { %v175_v59 = vcombine.low %v159_v51, %v160_v52  ;;  %v176_v60 = vcombine.low %v161_v53, %v162_v54 }
  0xb0   :  { %v192_v61 = vcombine.low %v163_v55, %v164_v56  ;;  %v193_v62 = vcombine.low %v165_v57, %v166_v58 }
  0xb1   :  { %v183_v63 = vrot.slane %v175_v59, %v55_v12  ;;  %v190_v0 = vrot.slane %v176_v60, %v55_v12 }
  0xb2   :  { %v200_v1 = vrot.slane %v192_v61, %v55_v12  ;;  %v207_v2 = vrot.slane %v193_v62, %v55_v12 }
  0xb3   :  { %v191_v3 = vcombine.low %v183_v63, %v190_v0 }
  0xb4   :  { %v208_v4 = vcombine.low %v200_v1, %v207_v2 }
  0xb5   :  { %211 = vst [vmem:[#allocation7] sm:$0xff] %v191_v3 }
  0xb6   :  { %212 = vst [vmem:[#allocation7 + $0x8] sm:$0xff] %v208_v4 }
  0xb7   :  { %294 = shalt.err (!%p291_p6)
}
  0xb8   :  { %s295_s13 = scalar_lea.hbm %s378_s3, 256 }
  0xb9   :  { %p296_p7 = scmp.ne.s32.totalorder %s378_s3, %s295_s13  ;;  %p299_p8 = scmp.lt.u32.totalorder %s295_s13, %s378_s3 }
  0xbb   :  { %p301_p9 = pnand %p299_p8, %p296_p7 }
  0xbd   :  { %304 = shalt.err (!%p301_p9)
}
  0xbe   :  { %222 = dma.vmem_to_hbm [thread:$0]  %s220_s2, 256, %s378_s3, [#allocation4]  }
  0xbf   :  { %309 = dma.done.wait [#allocation4], 256  }
  0xc0   :  { %310 = vsyncadd [#allocation4], 4294967040 }
  0xc1   :  { %226 = vsyncpa [#allocation3], 1 }
  0xc2   :  { %227 = vsyncpa [#allocation6], 1 }
  0xc3   :  { %228 = vsyncpa [#allocation4], 1 }

</bundles_post_ra>
